<compile_context>
chip_gen: v7x
topology: tpu7x:2x2x1
jax: 0.10.0
libtpu: 0.0.40
codegen_flags: <defaults>
</compile_context>

<pallas_src>
import math
from typing import NamedTuple

import jax
import jax.numpy as jnp
from jax.experimental import pallas as pl
from jax.experimental.pallas import tpu as pltpu


def _round_up(x: int, m: int) -> int:
    return ((x + m - 1) // m) * m


def _linreg_kernel(x_ref, w_ref, b_ref, o_ref):
    # x_ref : (TM, K)   w_ref : (K, N)   b_ref : (1, N)   o_ref : (TM, N)
    o_ref[...] = (
        jnp.dot(x_ref[...], w_ref[...], preferred_element_type=jnp.float32)
        + b_ref[...]
    )


class PackedLinearParams(NamedTuple):
    w: jax.Array      # (k_big, n_big)  block-diagonal W^T, lane-padded, f32
    b: jax.Array      # (1, n_big)      tiled bias, f32
    in_size: int
    out_size: int
    pack: int


def prepare_linear_params(weight, bias, *, max_packed_k: int = 4096) -> PackedLinearParams:
    """One-time parameter prep (do NOT call per forward).

    weight : (out_size, in_size)  -- PyTorch nn.Linear layout
    bias   : (out_size,)

    Builds a block-diagonal, lane-dense weight: `pack` copies of W^T on the
    diagonal so the packed output width is a full 128 lanes. Falls back to
    plain lane padding when out_size does not divide 128 (or is >= 128).
    """
    out_size, in_size = weight.shape
    w_t = weight.astype(jnp.float32).T            # (in, out)
    b = bias.astype(jnp.float32)

    pack = 1
    if 0 < out_size < 128 and 128 % out_size == 0:
        pack = 128 // out_size
        # Keep the block-diagonal weight small enough to stay VMEM-resident.
        while pack > 1 and pack * in_size > max_packed_k:
            pack //= 2

    k_big = pack * in_size
    n_used = pack * out_size
    n_big = _round_up(n_used, 128)

    w_block = jnp.kron(jnp.eye(pack, dtype=jnp.float32), w_t) if pack > 1 else w_t
    b_block = jnp.tile(b, pack)

    w_big = jnp.zeros((k_big, n_big), jnp.float32).at[:, :n_used].set(w_block)
    b_big = jnp.zeros((1, n_big), jnp.float32).at[0, :n_used].set(b_block)
    return PackedLinearParams(w=w_big, b=b_big, in_size=in_size,
                              out_size=out_size, pack=pack)


def linear_regression_forward(x, params: PackedLinearParams, hl: int, hf: int,
                              *, force_pallas: bool = False,
                              small_batch_threshold: int = 64):
    """Pallas equivalent of LinearRegression.forward.

    x : (B, ...) with prod(x.shape[1:]) == in_size (any float dtype, cast f32).
    Returns (out, None) with out shaped (B, hl, hf), f32.
    """
    B = x.shape[0]
    in_size, out_size, pack = params.in_size, params.out_size, params.pack
    k_big, n_big = params.w.shape

    flat_features = math.prod(x.shape[1:])
    if flat_features != in_size:
        raise ValueError(
            f"flattened feature size {flat_features} != linear in_size {in_size}")
    if out_size != hl * hf:
        raise ValueError(f"out_size {out_size} != hl*hf = {hl * hf}")

    # torch.flatten(x, 1).float()
    x_flat = x.reshape(B, in_size).astype(jnp.float32)

    # Pad batch only up to the packing factor (<= pack-1 rows, often zero).
    b_pad = _round_up(B, pack)
    if b_pad != B:
        x_flat = jnp.pad(x_flat, ((0, b_pad - B), (0, 0)))
    bp = b_pad // pack                       # packed rows
    x_packed = x_flat.reshape(bp, k_big)     # free row-major view

    if B < small_batch_threshold and not force_pallas:
        # XLA fast path: at tiny B, pallas_call fixed cost dwarfs compute.
        out_packed = x_packed @ params.w + params.b
    else:
        # Batch tile: multiple of 8, VMEM-budgeted, and split so the grid has
        # >= 2 steps (lets v7x distribute the "parallel" axis over its 2 TCs).
        bytes_per_row = 4 * (k_big + n_big)
        tm_cap = max(8, min(1024, ((8 << 20) // (2 * bytes_per_row)) // 8 * 8))
        if bp <= 8:
            tm = bp                                           # single full block
        else:
            tm = min(tm_cap, _round_up(pl.cdiv(bp, 2), 8))
        grid = (pl.cdiv(bp, tm),)

        tile_bytes = 4 * tm * (k_big + n_big)
        param_bytes = 4 * (k_big * n_big + n_big)
        vmem_bytes = int(min(max(2 * tile_bytes + 2 * param_bytes + (4 << 20),
                                 16 << 20),
                             48 << 20))      # stay under v7x's 64 MiB physical

        out_packed = pl.pallas_call(
            _linreg_kernel,
            out_shape=jax.ShapeDtypeStruct((bp, n_big), jnp.float32),
            grid_spec=pltpu.PrefetchScalarGridSpec(
                num_scalar_prefetch=0,
                grid=grid,
                in_specs=[
                    pl.BlockSpec((tm, k_big), lambda i: (i, 0)),     # x tile, pipelined
                    pl.BlockSpec((k_big, n_big), lambda i: (0, 0)),  # weight, resident
                    pl.BlockSpec((1, n_big), lambda i: (0, 0)),      # bias, resident
                ],
                out_specs=pl.BlockSpec((tm, n_big), lambda i: (i, 0)),
            ),
            compiler_params=pltpu.CompilerParams(
                dimension_semantics=("parallel",),
                vmem_limit_bytes=vmem_bytes,
            ),
        )(x_packed, params.w, params.b)

    # Unpack: drop unused lanes (only in the pack==1 fallback), free row-major
    # reshape back to (b_pad, out_size), drop batch padding, reshape like torch.
    n_used = pack * out_size
    if n_used != n_big:
        out_packed = out_packed[:, :n_used]
    out_flat = out_packed.reshape(b_pad, out_size)
    if b_pad != B:
        out_flat = out_flat[:B]
    return out_flat.reshape(-1, hl, hf), None


def init_linear_params(key, in_size, out_size):
    """Deterministic init matching torch.nn.Linear default: U(-1/sqrt(in), 1/sqrt(in))."""
    kw, kb = jax.random.split(key)
    bound = 1.0 / math.sqrt(in_size)
    weight = jax.random.uniform(
        kw, (out_size, in_size), minval=-bound, maxval=bound, dtype=jnp.float32)
    bias = jax.random.uniform(
        kb, (out_size,), minval=-bound, maxval=bound, dtype=jnp.float32)
    return weight, bias


if __name__ == "__main__":
    # Model hyperparameters (small, consistent with the module's constructor).
    window_l, window_f = 8, 4     # input time-series: 8 steps, 4 features
    horizon_l, horizon_f = 2, 8   # forecast: 2 steps, 8 features
    in_size = window_l * window_f     # 32
    out_size = horizon_l * horizon_f  # 16
    batch = 2

    key = jax.random.PRNGKey(0)
    k_x, k_p = jax.random.split(key)

    x = jax.random.normal(k_x, (batch, window_l, window_f), dtype=jnp.float32)
    weight, bias = init_linear_params(k_p, in_size, out_size)

    # One-time parameter preparation (block-diagonal packing), outside hot path.
    params = prepare_linear_params(weight, bias)

    # Small batch: force the Pallas path so the kernel itself is exercised.
    out, aux = linear_regression_forward(
        x, params, horizon_l, horizon_f, force_pallas=True)
    out = jax.block_until_ready(out)

    ref = (x.reshape(batch, -1) @ weight.T + bias).reshape(-1, horizon_l, horizon_f)
    assert out.shape == (batch, horizon_l, horizon_f)
    assert aux is None
    assert jnp.allclose(out, ref, atol=1e-5, rtol=1e-5)

    # Larger, non-multiple-of-8 batch: exercises batch padding, the packed
    # reshape, a multi-step pipelined grid, and the ragged final block.
    batch2 = 300
    x2 = jax.random.normal(k_x, (batch2, window_l, window_f), dtype=jnp.float32)
    out2, _ = linear_regression_forward(x2, params, horizon_l, horizon_f)
    out2 = jax.block_until_ready(out2)
    ref2 = (x2.reshape(batch2, -1) @ weight.T + bias).reshape(-1, horizon_l, horizon_f)
    assert out2.shape == (batch2, horizon_l, horizon_f)
    assert jnp.allclose(out2, ref2, atol=1e-5, rtol=1e-5)

    print("KERNEL_OK")
</pallas_src>

<mosaic_0001>
module attributes {stable_mosaic.version = 11 : i64} {
  func.func @_linreg_kernel(%arg0: i32, %arg1: memref<1x256xf32, #tpu.memory_space<vmem>>, %arg2: memref<256x128xf32, #tpu.memory_space<vmem>>, %arg3: memref<1x128xf32, #tpu.memory_space<vmem>>, %arg4: memref<1x128xf32, #tpu.memory_space<vmem>>) attributes {dimension_semantics = [#tpu.dimension_semantics<parallel>], iteration_bounds = array<i64: 1>, scalar_prefetch = 0 : i64, scratch_operands = 0 : i64, tpu.core_type = #tpu.core_type<tc>, window_params = [{transform_indices = @transform_0, window_bounds = array<i64: 1, 256>}, {pipeline_mode = #tpu.pipeline_mode<synchronous>, transform_indices = @transform_1, window_bounds = array<i64: 256, 128>}, {pipeline_mode = #tpu.pipeline_mode<synchronous>, transform_indices = @transform_2, window_bounds = array<i64: 1, 128>}, {transform_indices = @transform_3, window_bounds = array<i64: 1, 128>}]} {
    %c0 = arith.constant 0 : index
    %c0_0 = arith.constant 0 : index
    %0 = vector.load %arg1[%c0, %c0_0] : memref<1x256xf32, #tpu.memory_space<vmem>>, vector<1x256xf32>
    %c0_1 = arith.constant 0 : index
    %c0_2 = arith.constant 0 : index
    %1 = vector.load %arg2[%c0_1, %c0_2] : memref<256x128xf32, #tpu.memory_space<vmem>>, vector<256x128xf32>
    %cst = arith.constant dense<0.000000e+00> : vector<1x128xf32>
    %2 = tpu.matmul %0, %1, %cst {dimension_numbers = #tpu.dot_dimension_numbers<[1], [0], [0], [1], [0, 0, 1, 1], [], []>} : vector<1x256xf32>, vector<256x128xf32>, vector<1x128xf32> -> vector<1x128xf32>
    %c0_3 = arith.constant 0 : index
    %c0_4 = arith.constant 0 : index
    %3 = vector.load %arg3[%c0_3, %c0_4] : memref<1x128xf32, #tpu.memory_space<vmem>>, vector<1x128xf32>
    %4 = arith.addf %2, %3 : vector<1x128xf32>
    %c0_5 = arith.constant 0 : index
    %c0_6 = arith.constant 0 : index
    %5 = vector.load %arg4[%c0_5, %c0_6] : memref<1x128xf32, #tpu.memory_space<vmem>>, vector<1x128xf32>
    tpu.vector_store %arg4[%c0_5, %c0_6], %4 {strides = array<i32>} : memref<1x128xf32, #tpu.memory_space<vmem>>, vector<1x128xf32>,
    return
  }
  func.func @transform_0(%arg0: i32) -> (i32, i32) {
    %c0_i32 = arith.constant 0 : i32
    %c0_i32_0 = arith.constant 0 : i32
    return %arg0, %c0_i32 : i32, i32
  }
  func.func @transform_1(%arg0: i32) -> (i32, i32) {
    %c0_i32 = arith.constant 0 : i32
    %c0_i32_0 = arith.constant 0 : i32
    %c0_i32_1 = arith.constant 0 : i32
    return %c0_i32, %c0_i32_0 : i32, i32
  }
  func.func @transform_2(%arg0: i32) -> (i32, i32) {
    %c0_i32 = arith.constant 0 : i32
    %c0_i32_0 = arith.constant 0 : i32
    %c0_i32_1 = arith.constant 0 : i32
    return %c0_i32, %c0_i32_0 : i32, i32
  }
  func.func @transform_3(%arg0: i32) -> (i32, i32) {
    %c0_i32 = arith.constant 0 : i32
    %c0_i32_0 = arith.constant 0 : i32
    return %arg0, %c0_i32 : i32, i32
  }
}

</mosaic_0001>

<bundles_post_ra>
// kernel: tpu_custom_call.1
= control target key start
LH: loop header
LB: loop body
LE: loop exit
PB: predicated region body
PF: predicated region fallthrough
CT: control target
= control target key end

     0   :  { %8 = vsyncpa [#allocation3], 0  ;;  %s388_s0 = inlined_call_operand.hbm [shape: f32[1,256], index: 0, kind: input, shape index: {}]   ;;  %s389_s1 = inlined_call_operand.hbm [shape: f32[256,128], index: 1, kind: input, shape index: {}]   ;;  %s390_s2 = inlined_call_operand.vmem [shape: f32[1,128], index: 2, kind: input, shape index: {}]   ;;  %s391_s3 = inlined_call_operand.hbm [shape: f32[1,128], index: 3, kind: output, shape index: {}]  }
   0x1   :  { %9 = vsyncpa [#allocation6], 0 }
   0x2   :  { %10 = vsyncpa [#allocation4], 0  ;;  %s317_s12 = smov [#allocation2]   ;;  %s318_s14 = smov [#allocation5]  }
   0x3   :  { %s17_s13 = sshll.u32 %s317_s12, 4  ;;  %s26_s15 = sshll.u32 %s318_s14, 4  ;;  %s18_s13 = int_to_ptr.vmem [resolvable:$true] %s17_s13  ;;  %s342_s15 = int_to_ptr.vmem [resolvable:$true] %s26_s15 }
   0x4   :  { %s245_s18 = scalar_lea.hbm %s388_s0, 32 }
   0x5   :  { %p246_p0 = scmp.ne.s32.totalorder %s388_s0, %s245_s18  ;;  %p249_p1 = scmp.lt.u32.totalorder %s245_s18, %s388_s0 }
   0x7   :  { %p251_p2 = pnand %p249_p1, %p246_p0 }
   0x9   :  { %254 = shalt.err (!%p251_p2)
}
   0xa   :  { %s255_s23 = scalar_lea.vmem %s18_s13, 32  ;;  %p260_p4 = scmp.lt.s32.totalorder %s18_s13, %s18_s13 }
   0xb   :  { %p256_p3 = scmp.ne.s32.totalorder %s18_s13, %s255_s23  ;;  %p261_p5 = scmp.lt.s32.totalorder %s255_s23, %s255_s23 }
   0xd   :  { %p262_p6 = por %p261_p5, %p260_p4 }
   0xf   :  { %p263_p7 = pnand %p262_p6, %p256_p3 }
  0x11   :  { %266 = shalt.err (!%p263_p7)
}
  0x12   :  { %20 = dma.hbm_to_vmem [thread:$0]  %s388_s0, 32, %s18_s13, [#allocation3]  }
  0x13   :  { %s267_s28 = scalar_lea.hbm %s389_s1, 4096 }
  0x14   :  { %p268_p8 = scmp.ne.s32.totalorder %s389_s1, %s267_s28  ;;  %p271_p9 = scmp.lt.u32.totalorder %s267_s28, %s389_s1 }
  0x16   :  { %p273_p10 = pnand %p271_p9, %p268_p8 }
  0x18   :  { %276 = shalt.err (!%p273_p10)
}
  0x19   :  { %s277_s6 = scalar_lea.vmem %s342_s15, 4096  ;;  %p282_p12 = scmp.lt.s32.totalorder %s342_s15, %s342_s15 }
  0x1a   :  { %p278_p11 = scmp.ne.s32.totalorder %s342_s15, %s277_s6  ;;  %p283_p13 = scmp.lt.s32.totalorder %s277_s6, %s277_s6 }
  0x1c   :  { %p284_p0 = por %p283_p13, %p282_p12 }
  0x1e   :  { %p285_p1 = pnand %p284_p0, %p278_p11 }
  0x20   :  { %288 = shalt.err (!%p285_p1)
}
  0x21   :  { %s319_s0 = smov 128   ;;  %s320_s7 = smov 8  }
  0x22   :  { %32 = dma.hbm_to_vmem [thread:$0]  %s389_s1, 4096, %s342_s15, [#allocation6], %s319_s0, %s319_s0, %s320_s7  }
  0x23   :  { %311 = dma.done.wait [#allocation3], 32  }
  0x24   :  { %312 = vsyncadd [#allocation3], 4294967264 }
  0x25   :  { %313 = dma.done.wait [#allocation6], 4096  }
  0x26   :  { %314 = vsyncadd [#allocation6], 4294963200  ;;  %v76_v0 = vlaneseq  ;;  %v58_v1 = vld [vmem:[#allocation5 + $0x80] sm:$0xff]  ;;  %v59_v2 = vld [vmem:[#allocation5 + $0x88] sm:$0xff]  ;;  %s321_s11 = smov [#allocation7]  }
  0x27   :  { %v42_v3 = vld [vmem:[#allocation5] sm:$0xff]  ;;  %v208_v4 = vpack.c.bf16 %v59_v2, %v58_v1  ;;  %v43_v5 = vld [vmem:[#allocation5 + $0x8] sm:$0xff]  ;;  %v60_v6 = vld [vmem:[#allocation5 + $0x90] sm:$0xff]  ;;  %s163_s12 = sshll.u32 %s321_s11, 4  ;;  %s164_s12 = int_to_ptr.vmem [resolvable:$true] %s163_s12 }
  0x28   :  { %v61_v7 = vld [vmem:[#allocation5 + $0x98] sm:$0xff]  ;;  %v210_v8 = vpack.c.bf16 %v43_v5, %v42_v3  ;;  %v44_v10 = vld [vmem:[#allocation5 + $0x10] sm:$0xff]  ;;  %v62_v12 = vld [vmem:[#allocation5 + $0xa0] sm:$0xff]  ;;  %v77_v14 = vshrl.u32 %v76_v0, 7  ;;  %s289_s13 = scalar_lea.vmem %s164_s12, 16  ;;  %s293_s14 = scalar_lea.vmem %s164_s12, 32 }
  0x29   :  { %v212_v9 = vpack.c.bf16 %v61_v7, %v60_v6  ;;  %v45_v11 = vld [vmem:[#allocation5 + $0x18] sm:$0xff]  ;;  %209 = vmatprep.subr.bf16.mxu0 %v208_v4  ;;  %v63_v13 = vld [vmem:[#allocation5 + $0xa8] sm:$0xff]  ;;  %v46_v17 = vld [vmem:[#allocation5 + $0x20] sm:$0xff]  ;;  %p290_p2 = scmp.ne.s32.totalorder %s164_s12, %s289_s13  ;;  %p294_p3 = scmp.lt.s32.totalorder %s164_s12, %s164_s12 }
  0x2a   :  { %211 = vmatpush3.bf16.msra.mxu0 %v210_v8  ;;  %v214_v15 = vpack.c.bf16 %v45_v11, %v44_v10  ;;  %v216_v16 = vpack.c.bf16 %v63_v13, %v62_v12  ;;  %v47_v18 = vld [vmem:[#allocation5 + $0x28] sm:$0xff]  ;;  %v64_v19 = vld [vmem:[#allocation5 + $0xb0] sm:$0xff]  ;;  %v65_v20 = vld [vmem:[#allocation5 + $0xb8] sm:$0xff]  ;;  %v82_v21 = vsub.s32 1, %v77_v14  ;;  %v78_v52 = vsub.s32 0, %v77_v14  ;;  %p295_p4 = scmp.lt.s32.totalorder %s293_s14, %s289_s13 }
  0x2b   :  { %213 = vmatprep.subr.bf16.mxu0 %v212_v9  ;;  %v218_v22 = vpack.c.bf16 %v47_v18, %v46_v17  ;;  %v220_v23 = vpack.c.bf16 %v65_v20, %v64_v19  ;;  %v48_v24 = vld [vmem:[#allocation5 + $0x30] sm:$0xff]  ;;  %v49_v25 = vld [vmem:[#allocation5 + $0x38] sm:$0xff]  ;;  %v66_v26 = vld [vmem:[#allocation5 + $0xc0] sm:$0xff] }
  0x2c   :  { %v67_v27 = vld [vmem:[#allocation5 + $0xc8] sm:$0xff]  ;;  %v41_v28 = vld [vmem:[#allocation2] sm:$0x3]  ;;  %v222_v30 = vpack.c.bf16 %v49_v25, %v48_v24  ;;  %v50_v32 = vld [vmem:[#allocation5 + $0x40] sm:$0xff]  ;;  %p296_p5 = por %p295_p4, %p294_p3 }
  0x2d   :  { %v83_v29 = vrot.slane %v41_v28, %v82_v21  ;;  %v224_v31 = vpack.c.bf16 %v67_v27, %v66_v26  ;;  %v51_v33 = vld [vmem:[#allocation5 + $0x48] sm:$0xff]  ;;  %v68_v34 = vld [vmem:[#allocation5 + $0xd0] sm:$0xff]  ;;  %v69_v35 = vld [vmem:[#allocation5 + $0xd8] sm:$0xff]  ;;  %v79_v54 = vrot.slane %v41_v28, %v78_v52 }
  0x2e   :  { %215 = vmatpush3.bf16.msra.mxu0 %v214_v15  ;;  %v226_v36 = vpack.c.bf16 %v51_v33, %v50_v32  ;;  %v228_v37 = vpack.c.bf16 %v69_v35, %v68_v34  ;;  %v52_v38 = vld [vmem:[#allocation5 + $0x50] sm:$0xff]  ;;  %v53_v39 = vld [vmem:[#allocation5 + $0x58] sm:$0xff]  ;;  %v70_v40 = vld [vmem:[#allocation5 + $0xe0] sm:$0xff]  ;;  %p297_p6 = pnand %p296_p5, %p290_p2 }
  0x2f   :  { %217 = vmatprep.subr.bf16.mxu0 %v216_v16  ;;  %150 = vmatprep.mubr.f32.mxu0 %v83_v29  ;;  %v71_v41 = vld [vmem:[#allocation5 + $0xe8] sm:$0xff]  ;;  %v230_v42 = vpack.c.bf16 %v53_v39, %v52_v38  ;;  %v54_v44 = vld [vmem:[#allocation5 + $0x60] sm:$0xff]  ;;  %v72_v46 = vld [vmem:[#allocation5 + $0xf0] sm:$0xff] }
  0x30   :  { %v232_v43 = vpack.c.bf16 %v71_v41, %v70_v40  ;;  %v55_v45 = vld [vmem:[#allocation5 + $0x68] sm:$0xff]  ;;  %v73_v47 = vld [vmem:[#allocation5 + $0xf8] sm:$0xff]  ;;  %v56_v50 = vld [vmem:[#allocation5 + $0x70] sm:$0xff] }
  0x31   :  { %v234_v48 = vpack.c.bf16 %v55_v45, %v54_v44  ;;  %v236_v49 = vpack.c.bf16 %v73_v47, %v72_v46  ;;  %v57_v51 = vld [vmem:[#allocation5 + $0x78] sm:$0xff] }
  0x32   :  { %219 = vmatpush3.bf16.msra.mxu0 %v218_v22  ;;  %v238_v53 = vpack.c.bf16 %v57_v51, %v56_v50  ;;  %v74_v56 = vld [vmem:[%s390_s2] sm:$0x1] }
  0x33   :  { %221 = vmatprep.subr.bf16.mxu0 %v220_v23 }
  0x36   :  { %223 = vmatpush3.bf16.msra.mxu0 %v222_v30 }
  0x37   :  { %225 = vmatprep.subr.bf16.mxu0 %v224_v31 }
  0x3a   :  { %227 = vmatpush3.bf16.msra.mxu0 %v226_v36 }
  0x3b   :  { %229 = vmatprep.subr.bf16.mxu0 %v228_v37 }
  0x3e   :  { %231 = vmatpush3.bf16.msra.mxu0 %v230_v42 }
  0x3f   :  { %233 = vmatprep.subr.bf16.mxu0 %v232_v43 }
  0x42   :  { %235 = vmatpush3.bf16.msra.mxu0 %v234_v48 }
  0x43   :  { %237 = vmatprep.subr.bf16.mxu0 %v236_v49 }
  0x46   :  { %239 = vmatpush3.bf16.msra.mxu0 %v238_v53 }
  0x49   :  { %151 = vmatmul.mubr.f32.vlgmr.msra.gmra.mrb[0].mxu0 %v79_v54 }
 0x11c   :  { %v205_v55 = vpop.f32.mrb[0].mxu0 }
 0x11d   :  { %v206_v57 = vpop.f32.mrb[1].mxu0 }
 0x11e   :  { %v207_v58 = vadd.f32 %v206_v57, %v205_v55 }
 0x120   :  { %v153_v59 = vadd.f32 %v207_v58, %v74_v56 }
 0x122   :  { %156 = vst [vmem:[#allocation7] sm:$0x1] %v153_v59 }
 0x123   :  { %300 = shalt.err (!%p297_p6)
}
 0x124   :  { %s301_s17 = scalar_lea.hbm %s391_s3, 16 }
 0x125   :  { %p302_p7 = scmp.ne.s32.totalorder %s391_s3, %s301_s17  ;;  %p305_p8 = scmp.lt.u32.totalorder %s301_s17, %s391_s3 }
 0x127   :  { %p307_p9 = pnand %p305_p8, %p302_p7 }
 0x129   :  { %310 = shalt.err (!%p307_p9)
}
 0x12a   :  { %166 = dma.vmem_to_hbm [thread:$0]  %s164_s12, 16, %s391_s3, [#allocation4]  }
 0x12b   :  { %315 = dma.done.wait [#allocation4], 16  }
 0x12c   :  { %316 = vsyncadd [#allocation4], 4294967280 }
 0x12d   :  { %170 = vsyncpa [#allocation3], 1 }
 0x12e   :  { %171 = vsyncpa [#allocation6], 1 }
 0x12f   :  { %172 = vsyncpa [#allocation4], 1 }

</bundles_post_ra>
